<compile_context>
chip_gen: v5e
topology: v5e:2x2
jax: 0.10.0
libtpu: 0.0.40
codegen_flags: <defaults>
</compile_context>

<pallas_src>
import functools

import jax
import jax.numpy as jnp
from jax import lax
from jax.experimental import pallas as pl
from jax.experimental.pallas import tpu as pltpu


def _label_smooth_kernel(logits_ref, target_ref, loss_ref, *, alpha,
                         num_classes, n_total, tile_n, resident_target):
    i = pl.program_id(0)

    # (tile_n, C) logits tile in native dtype; compute in f32.
    x = logits_ref[...].astype(jnp.float32)

    if resident_target:
        # Whole (padded) target lives resident in VMEM; slice this tile's rows.
        row0 = pl.multiple_of(i * tile_n, 8)
        tgt = target_ref[pl.ds(row0, tile_n), :]           # (tile_n, 1) int32
    else:
        tgt = target_ref[...]                              # (tile_n, 1) int32

    # Numerically stable logsumexp over classes (== log softmax denominator of
    # torch.nn.Softmax(dim=1) followed by torch.log).
    m = jnp.max(x, axis=1, keepdims=True)                  # (tile_n, 1)
    sum_e = jnp.sum(jnp.exp(x - m), axis=1, keepdims=True)
    logz = m + jnp.log(sum_e)                              # (tile_n, 1)

    # x[i, target[i]] via a lane-iota compare (no one-hot matrix materialized)
    # plus the plain class sum for the smoothing term.
    cls_idx = lax.broadcasted_iota(jnp.int32, x.shape, 1)  # (tile_n, C)
    x_t = jnp.sum(jnp.where(cls_idx == tgt, x, 0.0), axis=1, keepdims=True)
    x_sum = jnp.sum(x, axis=1, keepdims=True)              # (tile_n, 1)

    # loss_i = logz_i - (1-alpha)*x_i[t_i] - (alpha/C)*sum_j x_ij
    per = logz - (1.0 - alpha) * x_t - (alpha / float(num_classes)) * x_sum

    # Mask padded rows of a ragged last tile BEFORE the store (garbage rows may
    # hold Inf/NaN after exp/logsumexp; the select discards them).
    if n_total % tile_n != 0:
        row = lax.broadcasted_iota(jnp.int32, per.shape, 0) + i * tile_n
        per = jnp.where(row < n_total, per, 0.0)

    loss_ref[...] = per


def _vmem_plan(num_classes, itemsize):
    """Generation-aware VMEM plan -> (vmem_limit_bytes, auto_tile_n).

    Budgets for the double-buffered native-dtype logits blocks PLUS ~3
    full-width f32 in-kernel temporaries (f32 cast, exp(x-m), class iota).
    """
    try:
        phys = int(pltpu.get_tpu_info().vmem_capacity_bytes)
    except Exception:
        phys = 64 * 1024 * 1024           # conservative: v7x per-TC VMEM
    # Scoped limit with headroom under physical: 96 MiB on v5e/v6e, 48 MiB on v7x.
    vmem_limit = min((phys * 3) // 4, 96 * 1024 * 1024)
    # Bytes per batch row: 2x (double-buffered) input + ~3 f32 temporaries.
    per_row = num_classes * (2 * itemsize + 3 * 4)
    budget = vmem_limit - 4 * 1024 * 1024  # margin: output blocks, target, misc
    tile = max(budget // per_row, 32)
    return int(vmem_limit), int(min(tile, 4096))


def label_smooth_loss(logits, target, num_classes, alpha=0.1, tile_n=None):
    """logits: (N, C) float (any float dtype), target: (N,) int -> scalar f32 loss."""
    n, c = logits.shape
    assert c == num_classes

    vmem_limit, auto_tile = _vmem_plan(c, logits.dtype.itemsize)
    if tile_n is None:
        tile_n = auto_tile
    tile_n = int(min(tile_n, n))
    if tile_n < n:
        tile_n = max((tile_n // 32) * 32, 32)  # sublane-safe for f32/bf16/int8
        tile_n = min(tile_n, n)
    grid_n = pl.cdiv(n, tile_n)
    n_pad = grid_n * tile_n

    # int32 targets, padded so every target / output block is full (in-bounds).
    tgt = target.astype(jnp.int32).reshape(n, 1)
    if n_pad != n:
        tgt = jnp.pad(tgt, ((0, n_pad - n), (0, 0)))

    # Keep the target resident in VMEM (one DMA total) when its (8,128)-tiled
    # footprint is small; otherwise stream a (tile_n, 1) block per step.
    resident_target = (pl.cdiv(n_pad, 8) * 8) * 128 * 4 <= 2 * 1024 * 1024
    if resident_target:
        tgt_spec = pl.BlockSpec((n_pad, 1), lambda i: (0, 0))
    else:
        tgt_spec = pl.BlockSpec((tile_n, 1), lambda i: (i, 0))

    kernel = functools.partial(
        _label_smooth_kernel,
        alpha=float(alpha),
        num_classes=int(num_classes),
        n_total=int(n),
        tile_n=int(tile_n),
        resident_target=bool(resident_target),
    )

    per_row = pl.pallas_call(
        kernel,
        out_shape=jax.ShapeDtypeStruct((n_pad, 1), jnp.float32),
        grid_spec=pltpu.PrefetchScalarGridSpec(
            num_scalar_prefetch=0,
            grid=(grid_n,),
            in_specs=[
                # Logits tiled over the batch axis; native dtype (no upcast in HBM).
                pl.BlockSpec((tile_n, c), lambda i: (i, 0)),
                tgt_spec,
            ],
            # Disjoint per-tile output blocks -> safe to shard the axis across cores.
            out_specs=pl.BlockSpec((tile_n, 1), lambda i: (i, 0)),
        ),
        compiler_params=pltpu.CompilerParams(
            dimension_semantics=("parallel",),   # no shared accumulator -> megacore OK
            vmem_limit_bytes=int(vmem_limit),
        ),
    )(logits, tgt)

    # Tiny final reduction in the wrapper (padded rows are exactly 0).
    return jnp.sum(per_row) / jnp.float32(n)


def _reference_loss(logits, target, num_classes, alpha=0.1):
    probs = jax.nn.softmax(logits.astype(jnp.float32), axis=1)
    one_hot = jax.nn.one_hot(target, num_classes, dtype=jnp.float32)
    one_hot = one_hot * (1.0 - alpha) + alpha / float(num_classes)
    return jnp.mean(jnp.sum(-one_hot * jnp.log(probs), axis=1))


if __name__ == "__main__":
    key = jax.random.PRNGKey(0)
    k1, k2, k3, k4 = jax.random.split(key, 4)
    alpha = 0.1

    # Case 1: single-tile f32 case (batch=8, classes=16).
    N1, C1 = 8, 16
    logits1 = jax.random.normal(k1, (N1, C1), dtype=jnp.float32)
    target1 = jax.random.randint(k2, (N1,), 0, C1, dtype=jnp.int32)
    loss1 = jax.block_until_ready(label_smooth_loss(logits1, target1, C1, alpha))
    ref1 = _reference_loss(logits1, target1, C1, alpha)
    assert jnp.allclose(loss1, ref1, atol=1e-5, rtol=1e-5), (loss1, ref1)

    # Case 2: multi-tile "parallel" grid with a ragged last tile (exercises the
    # per-tile partial outputs + row masking) and bf16 logits over HBM.
    N2, C2 = 40, 128
    logits2 = jax.random.normal(k3, (N2, C2), dtype=jnp.float32).astype(jnp.bfloat16)
    target2 = jax.random.randint(k4, (N2,), 0, C2, dtype=jnp.int32)
    loss2 = jax.block_until_ready(
        label_smooth_loss(logits2, target2, C2, alpha, tile_n=32))
    ref2 = _reference_loss(logits2.astype(jnp.float32), target2, C2, alpha)
    assert jnp.allclose(loss2, ref2, atol=1e-4, rtol=1e-4), (loss2, ref2)

    print("KERNEL_OK")
</pallas_src>

<mosaic_0001>
module attributes {stable_mosaic.version = 11 : i64} {
  func.func @_label_smooth_kernel(%arg0: i32, %arg1: memref<8x16xf32, #tpu.memory_space<vmem>>, %arg2: memref<8x1xi32, #tpu.memory_space<vmem>>, %arg3: memref<8x1xf32, #tpu.memory_space<vmem>>) attributes {dimension_semantics = [#tpu.dimension_semantics<parallel>], iteration_bounds = array<i64: 1>, scalar_prefetch = 0 : i64, scratch_operands = 0 : i64, tpu.core_type = #tpu.core_type<tc>, window_params = [{transform_indices = @transform_0, window_bounds = array<i64: 8, 16>}, {pipeline_mode = #tpu.pipeline_mode<synchronous>, transform_indices = @transform_1, window_bounds = array<i64: 8, 1>}, {transform_indices = @transform_2, window_bounds = array<i64: 8, 1>}]} {
    %c0 = arith.constant 0 : index
    %c0_0 = arith.constant 0 : index
    %0 = vector.load %arg1[%c0, %c0_0] : memref<8x16xf32, #tpu.memory_space<vmem>>, vector<8x16xf32>
    %c8_i32 = arith.constant 8 : i32
    %1 = arith.muli %arg0, %c8_i32 : i32
    %2 = tpu.assume_multiple %1, 8 : i32
    %3 = arith.index_cast %2 : i32 to index
    %c0_1 = arith.constant 0 : index
    %4 = vector.load %arg2[%3, %c0_1] : memref<8x1xi32, #tpu.memory_space<vmem>>, vector<8x1xi32>
    %cst = arith.constant dense<0xFF800000> : vector<8xf32>
    %5 = vector.multi_reduction <maximumf>, %0, %cst [1] : vector<8x16xf32> to vector<8xf32>
    %6 = vector.shape_cast %5 : vector<8xf32> to vector<8x1xf32>
    %7 = vector.broadcast %6 : vector<8x1xf32> to vector<8x16xf32>
    %8 = arith.subf %0, %7 : vector<8x16xf32>
    %9 = math.exp %8 : vector<8x16xf32>
    %cst_2 = arith.constant dense<0.000000e+00> : vector<8xf32>
    %10 = vector.multi_reduction <add>, %9, %cst_2 [1] : vector<8x16xf32> to vector<8xf32>
    %11 = vector.shape_cast %10 : vector<8xf32> to vector<8x1xf32>
    %12 = math.log %11 : vector<8x1xf32>
    %13 = arith.addf %6, %12 : vector<8x1xf32>
    %14 = tpu.iota {dimensions = array<i32: 1>} : vector<8x16xi32>
    %15 = vector.broadcast %4 : vector<8x1xi32> to vector<8x16xi32>
    %16 = arith.cmpi eq, %14, %15 : vector<8x16xi32>
    %cst_3 = arith.constant 0.000000e+00 : f32
    %17 = vector.broadcast %cst_3 : f32 to vector<8x16xf32>
    %18 = arith.select %16, %0, %17 : vector<8x16xi1>, vector<8x16xf32>
    %cst_4 = arith.constant dense<0.000000e+00> : vector<8xf32>
    %19 = vector.multi_reduction <add>, %18, %cst_4 [1] : vector<8x16xf32> to vector<8xf32>
    %20 = vector.shape_cast %19 : vector<8xf32> to vector<8x1xf32>
    %cst_5 = arith.constant dense<0.000000e+00> : vector<8xf32>
    %21 = vector.multi_reduction <add>, %0, %cst_5 [1] : vector<8x16xf32> to vector<8xf32>
    %22 = vector.shape_cast %21 : vector<8xf32> to vector<8x1xf32>
    %cst_6 = arith.constant 0.899999976 : f32
    %23 = vector.broadcast %cst_6 : f32 to vector<8x1xf32>
    %24 = arith.mulf %23, %20 : vector<8x1xf32>
    %25 = arith.subf %13, %24 : vector<8x1xf32>
    %cst_7 = arith.constant 6.250000e-03 : f32
    %26 = vector.broadcast %cst_7 : f32 to vector<8x1xf32>
    %27 = arith.mulf %26, %22 : vector<8x1xf32>
    %28 = arith.subf %25, %27 : vector<8x1xf32>
    %c0_8 = arith.constant 0 : index
    %c0_9 = arith.constant 0 : index
    %29 = vector.load %arg3[%c0_8, %c0_9] : memref<8x1xf32, #tpu.memory_space<vmem>>, vector<8x1xf32>
    tpu.vector_store %arg3[%c0_8, %c0_9], %28 {strides = array<i32>} : memref<8x1xf32, #tpu.memory_space<vmem>>, vector<8x1xf32>,
    return
  }
  func.func @transform_0(%arg0: i32) -> (i32, i32) {
    %c0_i32 = arith.constant 0 : i32
    %c0_i32_0 = arith.constant 0 : i32
    return %arg0, %c0_i32 : i32, i32
  }
  func.func @transform_1(%arg0: i32) -> (i32, i32) {
    %c0_i32 = arith.constant 0 : i32
    %c0_i32_0 = arith.constant 0 : i32
    %c0_i32_1 = arith.constant 0 : i32
    return %c0_i32, %c0_i32_0 : i32, i32
  }
  func.func @transform_2(%arg0: i32) -> (i32, i32) {
    %c0_i32 = arith.constant 0 : i32
    %c0_i32_0 = arith.constant 0 : i32
    return %arg0, %c0_i32 : i32, i32
  }
}

</mosaic_0001>

<bundles_post_ra>
// kernel: tpu_custom_call.1
= control target key start
LH: loop header
LB: loop body
LE: loop exit
PB: predicated region body
PF: predicated region fallthrough
CT: control target
= control target key end

     0   :  { %vm15_vm0 = vcmask 130048   ;;  %v57_v1 = vmov 0   ;;  %v28_v10 = vlaneseq  ;;  %vm45_vm2 = vcmask 7168   ;;  %s86_s0 = inlined_call_operand.vmem [shape: f32[8,16], index: 0, kind: input, shape index: {}]   ;;  %s87_s1 = inlined_call_operand.vmem [shape: s32[8,1], index: 1, kind: input, shape index: {}]   ;;  %s88_s2 = inlined_call_operand.vmem [shape: f32[8,1], index: 2, kind: output, shape index: {}]  }
   0x1   :  { %v11_v0 = vld [vmem:[%s86_s0] sm:$0xff]  ;;  %52 = vset.pattern.permute.xlu0 %v57_v1 }
   0x2   :  { %v16_v2 = vsel %vm15_vm0, %v11_v0, -inf  ;;  %v14_v3 = vld [vmem:[%s87_s1] sm:$0xff]  ;;  %v38_v4 = vsel %vm15_vm0, %v11_v0, 0.0  ;;  %v29_v11 = vand.u32 127, %v28_v10 }
   0x3   :  { %17 = vmax.xlane.f32.xlu0 %v16_v2  ;;  %39 = vadd.xlane.f32.xlu2 %v38_v4 }
  0x17   :  { %31 = vperm.xlu0 %52, %v14_v3  }
  0x76   :  { %v18_v5 = vpop.xlane.xlu0 %17  ;;  %v40_v18 = vpop.xlane.xlu2 %39 }
  0x77   :  { %v19_v6 = vsub.f32 %v11_v0, %v18_v5  ;;  %v43_v22 = vmul.f32 0.00625, %v40_v18 }
  0x79   :  { %v20_v7 = vmul.f32 1.442695, %v19_v6 }
  0x7b   :  { %53 = vpow2.f32 %v20_v7 }
  0x81   :  { %v54_v8 = vpop.eup %53 }
  0x82   :  { %v22_v9 = vsel %vm15_vm0, %v54_v8, 0.0 }
  0x83   :  { %23 = vadd.xlane.f32.xlu1 %v22_v9 }
  0x89   :  { %v32_v12 = vpop.permute.xlu0 %31 }
  0x8a   :  { %vm33_vm1 = vcmp.eq.s32.totalorder %v29_v11, %v32_v12 }
  0x8b   :  { %v34_v13 = vsel %vm33_vm1, %v11_v0, 0.0 }
  0x8c   :  { %v35_v14 = vsel %vm15_vm0, %v34_v13, 0.0 }
  0x8d   :  { %36 = vadd.xlane.f32.xlu1 %v35_v14 }
  0xf6   :  { %v24_v15 = vpop.xlane.xlu1 %23 }
  0xf7   :  { %55 = vlog2.f32 %v24_v15 }
  0xfd   :  { %v56_v16 = vpop.eup %55 }
  0xfe   :  { %v26_v17 = vmul.f32 0.6931472, %v56_v16 }
 0x100   :  { %v27_v19 = vadd.f32 %v26_v17, %v18_v5  ;;  %v37_v20 = vpop.xlane.xlu1 %36 }
 0x101   :  { %v41_v21 = vmul.f32 0.9, %v37_v20 }
 0x103   :  { %v42_v23 = vsub.f32 %v27_v19, %v41_v21 }
 0x105   :  { %v44_v24 = vsub.f32 %v42_v23, %v43_v22 }
 0x107   :  { %46 = vst.msk [vmem:[%s88_s2] sm:$0xff] %vm45_vm2, %v44_v24 }

</bundles_post_ra>
